<compile_context>
chip_gen: v6e
topology: v6e:2x2x1
jax: 0.10.0
libtpu: 0.0.40
codegen_flags: <defaults>
</compile_context>

<pallas_src>
import math

import jax
import jax.numpy as jnp
from jax.experimental import pallas as pl
from jax.experimental.pallas import tpu as pltpu


def _round_up(x, m):
    return ((x + m - 1) // m) * m


def _round_down(x, m):
    return max(m, (x // m) * m)


def _gelu_exact(x):
    # Matches torch.nn.GELU() default (erf form, not tanh approximation).
    return 0.5 * x * (1.0 + jax.lax.erf(x * (1.0 / math.sqrt(2.0))))


def _vmem_capacity_bytes():
    try:
        cap = int(pltpu.get_tpu_info().vmem_capacity_bytes)
        if cap > 0:
            return cap
    except Exception:
        pass
    return 64 << 20  # conservative fallback = v7x per-TensorCore VMEM


def _pick_tf(ffn_p, target):
    """Largest multiple of 128 that divides ffn_p and is <= target (>=128)."""
    target = max(128, target)
    best = 128
    t = 256
    while t <= min(target, ffn_p):
        if ffn_p % t == 0:
            best = t
        t += 128
    return best


# ----------------------------------------------------------------------------
# Kernels
# ----------------------------------------------------------------------------

def _ffn_kernel_resident(x_ref, w1_ref, b1_ref, w2_ref, b2_ref, o_ref):
    """Grid = (row tiles,). Both weight matrices resident in VMEM."""
    h = jnp.dot(x_ref[...], w1_ref[...], preferred_element_type=jnp.float32)
    h = _gelu_exact(h + b1_ref[...].astype(jnp.float32))
    out = jnp.dot(h.astype(w2_ref.dtype), w2_ref[...],
                  preferred_element_type=jnp.float32)
    o_ref[...] = (out + b2_ref[...].astype(jnp.float32)).astype(o_ref.dtype)


def _ffn_kernel_tiled_direct(x_ref, w1_ref, b1_ref, w2_ref, b2_ref, o_ref):
    """Grid = (row tiles i, ffn tiles k). f32 output: accumulate into o_ref."""
    k = pl.program_id(1)
    h = jnp.dot(x_ref[...], w1_ref[...], preferred_element_type=jnp.float32)
    h = _gelu_exact(h + b1_ref[...].astype(jnp.float32))
    part = jnp.dot(h.astype(w2_ref.dtype), w2_ref[...],
                   preferred_element_type=jnp.float32)

    @pl.when(k == 0)
    def _():  # init folded into first reduction step (b2 added once, here)
        o_ref[...] = part + b2_ref[...].astype(jnp.float32)

    @pl.when(k > 0)
    def _():
        o_ref[...] += part


def _ffn_kernel_tiled_acc(x_ref, w1_ref, b1_ref, w2_ref, b2_ref, o_ref, acc_ref):
    """Grid = (row tiles i, ffn tiles k). Non-f32 output: f32 VMEM accumulator."""
    k = pl.program_id(1)
    h = jnp.dot(x_ref[...], w1_ref[...], preferred_element_type=jnp.float32)
    h = _gelu_exact(h + b1_ref[...].astype(jnp.float32))
    part = jnp.dot(h.astype(w2_ref.dtype), w2_ref[...],
                   preferred_element_type=jnp.float32)

    @pl.when(k == 0)
    def _():
        acc_ref[...] = part           # no separate zero pass

    @pl.when(k > 0)
    def _():
        acc_ref[...] += part

    @pl.when(k == pl.num_programs(1) - 1)
    def _():
        o_ref[...] = (acc_ref[...] + b2_ref[...].astype(jnp.float32)).astype(o_ref.dtype)


# ----------------------------------------------------------------------------
# Host-side wrappers
# ----------------------------------------------------------------------------

def prepare_ffn_params(w1, b1, w2, b2, *, lane=128):
    """One-time lane padding of weights/biases (keeps padding out of the hot path).

    w1: [hidden, ffn], w2: [ffn, hidden] (transpose of PyTorch nn.Linear layout).
    Zero padding is exactly neutral through matmul / bias / GELU.
    """
    hidden, ffn = w1.shape
    hidden_p = _round_up(hidden, lane)
    ffn_p = _round_up(ffn, lane)
    w1_p = jnp.pad(w1, ((0, hidden_p - hidden), (0, ffn_p - ffn)))
    b1_p = jnp.pad(b1.reshape(1, ffn), ((0, 0), (0, ffn_p - ffn)))
    w2_p = jnp.pad(w2, ((0, ffn_p - ffn), (0, hidden_p - hidden)))
    b2_p = jnp.pad(b2.reshape(1, hidden), ((0, 0), (0, hidden_p - hidden)))
    return w1_p, b1_p, w2_p, b2_p


def ffn_forward(x, w1_p, b1_p, w2_p, b2_p, *, row_tile=1024, ffn_tile=512):
    """x: [..., hidden] -> [..., hidden], fused Linear + GELU + Linear on TPU."""
    hidden = x.shape[-1]
    hidden_p, ffn_p = w1_p.shape
    orig_shape = x.shape
    out_dtype = x.dtype

    x2d = x.reshape(-1, hidden)
    M = x2d.shape[0]

    sub = 16 if out_dtype == jnp.bfloat16 else 8
    M_sub = max(sub, _round_up(M, sub))

    ab = jnp.dtype(x2d.dtype).itemsize
    wb = jnp.dtype(w1_p.dtype).itemsize
    ob = jnp.dtype(out_dtype).itemsize

    vmem_cap = _vmem_capacity_bytes()
    budget = int(vmem_cap * 0.85)

    weight_bytes = (2 * hidden_p * ffn_p + ffn_p + hidden_p) * wb
    use_acc_scratch = out_dtype != jnp.float32

    def res_need(tm):
        return (2 * tm * hidden_p * (ab + ob)   # double-buffered x / out tiles
                + 2 * weight_bytes              # resident weights (x2 safety)
                + tm * ffn_p * 4                # f32 hidden activation
                + tm * hidden_p * 4)            # f32 output temporary

    def tiled_need(tm, tf):
        return (2 * tm * hidden_p * (ab + ob)
                + 2 * (2 * hidden_p * tf + tf + hidden_p) * wb
                + tm * tf * 4
                + tm * hidden_p * 4
                + (tm * hidden_p * 4 if use_acc_scratch else 0))

    def shrink_tm(tm, need_fn):
        while tm > sub and need_fn(tm) > budget:
            tm = _round_down(tm // 2, sub)
        return tm

    # --- choose path / tiles against this generation's VMEM ------------------
    tf = ffn_p
    tm = min(_round_up(row_tile, sub), M_sub)
    resident = 2 * weight_bytes <= budget // 2
    if resident:
        tm = shrink_tm(tm, res_need)
        resident = res_need(tm) <= budget
    if not resident:
        tf = _pick_tf(ffn_p, ffn_tile)
        tm = min(_round_up(row_tile, sub), M_sub)
        tm = shrink_tm(tm, lambda t: tiled_need(t, tf))
        while tf > 128 and tiled_need(tm, tf) > budget:
            tf = _pick_tf(ffn_p, tf - 128)

    # v7x has 2 TensorCores: give the "parallel" row axis >= 2 tiles when possible.
    if _round_up(M, tm) // tm < 2 and tm >= 2 * sub:
        tm = _round_up(tm // 2, sub)

    need = res_need(tm) if resident else tiled_need(tm, tf)
    vmem_limit = max(32 << 20, int(need * 1.25))
    vmem_limit = min(vmem_limit, int(vmem_cap * 0.9))   # never exceed physical VMEM

    M_p = _round_up(M, tm)
    x_p = jnp.pad(x2d, ((0, M_p - M), (0, hidden_p - hidden)))

    out_shape = jax.ShapeDtypeStruct((M_p, hidden_p), out_dtype)

    if resident:
        kernel = _ffn_kernel_resident
        dims = ("parallel",)
        grid_spec = pltpu.PrefetchScalarGridSpec(
            num_scalar_prefetch=0,
            grid=(M_p // tm,),
            in_specs=[
                pl.BlockSpec((tm, hidden_p), lambda i: (i, 0)),
                pl.BlockSpec((hidden_p, ffn_p), lambda i: (0, 0)),
                pl.BlockSpec((1, ffn_p), lambda i: (0, 0)),
                pl.BlockSpec((ffn_p, hidden_p), lambda i: (0, 0)),
                pl.BlockSpec((1, hidden_p), lambda i: (0, 0)),
            ],
            out_specs=pl.BlockSpec((tm, hidden_p), lambda i: (i, 0)),
        )
    else:
        kernel = _ffn_kernel_tiled_acc if use_acc_scratch else _ffn_kernel_tiled_direct
        dims = ("parallel", "arbitrary")
        scratch = ([pltpu.VMEM((tm, hidden_p), jnp.float32)]
                   if use_acc_scratch else [])
        grid_spec = pltpu.PrefetchScalarGridSpec(
            num_scalar_prefetch=0,
            grid=(M_p // tm, ffn_p // tf),
            in_specs=[
                pl.BlockSpec((tm, hidden_p), lambda i, k: (i, 0)),
                pl.BlockSpec((hidden_p, tf), lambda i, k: (0, k)),
                pl.BlockSpec((1, tf), lambda i, k: (0, k)),
                pl.BlockSpec((tf, hidden_p), lambda i, k: (k, 0)),
                pl.BlockSpec((1, hidden_p), lambda i, k: (0, 0)),
            ],
            out_specs=pl.BlockSpec((tm, hidden_p), lambda i, k: (i, 0)),
            scratch_shapes=scratch,
        )

    out = pl.pallas_call(
        kernel,
        out_shape=out_shape,
        grid_spec=grid_spec,
        compiler_params=pltpu.CompilerParams(
            dimension_semantics=dims,
            vmem_limit_bytes=vmem_limit,
        ),
    )(x_p, w1_p, b1_p, w2_p, b2_p)

    return out[:M, :hidden].reshape(orig_shape)


def init_ffn_params(key, hidden_size, ffn_size, dtype=jnp.float32):
    """Deterministic init mimicking nn.Linear: U(-1/sqrt(fan_in), 1/sqrt(fan_in))."""
    k1, k2, k3, k4 = jax.random.split(key, 4)
    bound1 = 1.0 / math.sqrt(hidden_size)
    bound2 = 1.0 / math.sqrt(ffn_size)
    w1 = jax.random.uniform(k1, (hidden_size, ffn_size), dtype, -bound1, bound1)
    b1 = jax.random.uniform(k2, (ffn_size,), dtype, -bound1, bound1)
    w2 = jax.random.uniform(k3, (ffn_size, hidden_size), dtype, -bound2, bound2)
    b2 = jax.random.uniform(k4, (hidden_size,), dtype, -bound2, bound2)
    return w1, b1, w2, b2


if __name__ == "__main__":
    # TODO(synk): the PyTorch module takes dropout_rate but never applies dropout
    #             in forward(), so there is nothing to translate for it.
    batch, seq, hidden_size, ffn_size = 2, 8, 32, 64
    key = jax.random.PRNGKey(0)
    kx, kp = jax.random.split(key)

    x = jax.random.normal(kx, (batch, seq, hidden_size), jnp.float32)
    w1, b1, w2, b2 = init_ffn_params(kp, hidden_size, ffn_size)

    # One-time weight layout / padding (kept out of the per-call hot path).
    w1_p, b1_p, w2_p, b2_p = prepare_ffn_params(w1, b1, w2, b2)

    fwd = jax.jit(ffn_forward)
    y = jax.block_until_ready(fwd(x, w1_p, b1_p, w2_p, b2_p))

    # Pure-JAX reference of the fused op (erf GELU, matches torch.nn.GELU default).
    h_ref = x @ w1 + b1
    h_ref = 0.5 * h_ref * (1.0 + jax.lax.erf(h_ref / jnp.sqrt(2.0)))
    y_ref = h_ref @ w2 + b2

    assert y.shape == y_ref.shape
    assert jnp.allclose(y, y_ref, atol=1e-4, rtol=1e-4), "mismatch vs reference"

    print("KERNEL_OK")
</pallas_src>

<mosaic_0001>
module attributes {stable_mosaic.version = 11 : i64} {
  func.func @_ffn_kernel_resident(%arg0: i32, %arg1: memref<8x128xf32, #tpu.memory_space<vmem>>, %arg2: memref<128x128xf32, #tpu.memory_space<vmem>>, %arg3: memref<1x128xf32, #tpu.memory_space<vmem>>, %arg4: memref<128x128xf32, #tpu.memory_space<vmem>>, %arg5: memref<1x128xf32, #tpu.memory_space<vmem>>, %arg6: memref<8x128xf32, #tpu.memory_space<vmem>>) attributes {dimension_semantics = [#tpu.dimension_semantics<parallel>], iteration_bounds = array<i64: 2>, scalar_prefetch = 0 : i64, scratch_operands = 0 : i64, tpu.core_type = #tpu.core_type<tc>, window_params = [{transform_indices = @transform_0, window_bounds = array<i64: 8, 128>}, {pipeline_mode = #tpu.pipeline_mode<synchronous>, transform_indices = @transform_1, window_bounds = array<i64: 128, 128>}, {pipeline_mode = #tpu.pipeline_mode<synchronous>, transform_indices = @transform_2, window_bounds = array<i64: 1, 128>}, {pipeline_mode = #tpu.pipeline_mode<synchronous>, transform_indices = @transform_3, window_bounds = array<i64: 128, 128>}, {pipeline_mode = #tpu.pipeline_mode<synchronous>, transform_indices = @transform_4, window_bounds = array<i64: 1, 128>}, {transform_indices = @transform_5, window_bounds = array<i64: 8, 128>}]} {
    %c0 = arith.constant 0 : index
    %c0_0 = arith.constant 0 : index
    %0 = vector.load %arg1[%c0, %c0_0] : memref<8x128xf32, #tpu.memory_space<vmem>>, vector<8x128xf32>
    %c0_1 = arith.constant 0 : index
    %c0_2 = arith.constant 0 : index
    %1 = vector.load %arg2[%c0_1, %c0_2] : memref<128x128xf32, #tpu.memory_space<vmem>>, vector<128x128xf32>
    %cst = arith.constant dense<0.000000e+00> : vector<8x128xf32>
    %2 = tpu.matmul %0, %1, %cst {dimension_numbers = #tpu.dot_dimension_numbers<[1], [0], [0], [1], [0, 0, 1, 1], [], []>} : vector<8x128xf32>, vector<128x128xf32>, vector<8x128xf32> -> vector<8x128xf32>
    %c0_3 = arith.constant 0 : index
    %c0_4 = arith.constant 0 : index
    %3 = vector.load %arg3[%c0_3, %c0_4] : memref<1x128xf32, #tpu.memory_space<vmem>>, vector<1x128xf32>
    %4 = vector.broadcast %3 : vector<1x128xf32> to vector<8x128xf32>
    %5 = arith.addf %2, %4 : vector<8x128xf32>
    %cst_5 = arith.constant 5.000000e-01 : f32
    %6 = vector.broadcast %cst_5 : f32 to vector<8x128xf32>
    %7 = arith.mulf %6, %5 : vector<8x128xf32>
    %cst_6 = arith.constant 0.707106769 : f32
    %8 = vector.broadcast %cst_6 : f32 to vector<8x128xf32>
    %9 = arith.mulf %5, %8 : vector<8x128xf32>
    %10 = math.erf %9 : vector<8x128xf32>
    %cst_7 = arith.constant 1.000000e+00 : f32
    %11 = vector.broadcast %cst_7 : f32 to vector<8x128xf32>
    %12 = arith.addf %11, %10 : vector<8x128xf32>
    %13 = arith.mulf %7, %12 : vector<8x128xf32>
    %c0_8 = arith.constant 0 : index
    %c0_9 = arith.constant 0 : index
    %14 = vector.load %arg4[%c0_8, %c0_9] : memref<128x128xf32, #tpu.memory_space<vmem>>, vector<128x128xf32>
    %cst_10 = arith.constant dense<0.000000e+00> : vector<8x128xf32>
    %15 = tpu.matmul %13, %14, %cst_10 {dimension_numbers = #tpu.dot_dimension_numbers<[1], [0], [0], [1], [0, 0, 1, 1], [], []>} : vector<8x128xf32>, vector<128x128xf32>, vector<8x128xf32> -> vector<8x128xf32>
    %c0_11 = arith.constant 0 : index
    %c0_12 = arith.constant 0 : index
    %16 = vector.load %arg5[%c0_11, %c0_12] : memref<1x128xf32, #tpu.memory_space<vmem>>, vector<1x128xf32>
    %17 = vector.broadcast %16 : vector<1x128xf32> to vector<8x128xf32>
    %18 = arith.addf %15, %17 : vector<8x128xf32>
    %c0_13 = arith.constant 0 : index
    %c0_14 = arith.constant 0 : index
    %19 = vector.load %arg6[%c0_13, %c0_14] : memref<8x128xf32, #tpu.memory_space<vmem>>, vector<8x128xf32>
    tpu.vector_store %arg6[%c0_13, %c0_14], %18 {strides = array<i32>} : memref<8x128xf32, #tpu.memory_space<vmem>>, vector<8x128xf32>,
    return
  }
  func.func @transform_0(%arg0: i32) -> (i32, i32) {
    %c0_i32 = arith.constant 0 : i32
    %c0_i32_0 = arith.constant 0 : i32
    return %arg0, %c0_i32 : i32, i32
  }
  func.func @transform_1(%arg0: i32) -> (i32, i32) {
    %c0_i32 = arith.constant 0 : i32
    %c0_i32_0 = arith.constant 0 : i32
    %c0_i32_1 = arith.constant 0 : i32
    return %c0_i32, %c0_i32_0 : i32, i32
  }
  func.func @transform_2(%arg0: i32) -> (i32, i32) {
    %c0_i32 = arith.constant 0 : i32
    %c0_i32_0 = arith.constant 0 : i32
    %c0_i32_1 = arith.constant 0 : i32
    return %c0_i32, %c0_i32_0 : i32, i32
  }
  func.func @transform_3(%arg0: i32) -> (i32, i32) {
    %c0_i32 = arith.constant 0 : i32
    %c0_i32_0 = arith.constant 0 : i32
    %c0_i32_1 = arith.constant 0 : i32
    return %c0_i32, %c0_i32_0 : i32, i32
  }
  func.func @transform_4(%arg0: i32) -> (i32, i32) {
    %c0_i32 = arith.constant 0 : i32
    %c0_i32_0 = arith.constant 0 : i32
    %c0_i32_1 = arith.constant 0 : i32
    return %c0_i32, %c0_i32_0 : i32, i32
  }
  func.func @transform_5(%arg0: i32) -> (i32, i32) {
    %c0_i32 = arith.constant 0 : i32
    %c0_i32_0 = arith.constant 0 : i32
    return %arg0, %c0_i32 : i32, i32
  }
}

</mosaic_0001>

<bundles_post_ra>
// kernel: ffn_forward.1
= control target key start
LH: loop header
LB: loop body
LE: loop exit
PB: predicated region body
PF: predicated region fallthrough
CT: control target
= control target key end

     0   :  { %10 = vsyncpa [#allocation3], 0  ;;  %s885_s0 = inlined_call_operand.vmem [shape: f32[16,128], index: 0, kind: input, shape index: {}]   ;;  %s886_s1 = inlined_call_operand.hbm [shape: f32[128,128], index: 1, kind: input, shape index: {}]   ;;  %s887_s2 = inlined_call_operand.vmem [shape: f32[1,128], index: 2, kind: input, shape index: {}]   ;;  %s888_s3 = inlined_call_operand.hbm [shape: f32[128,128], index: 3, kind: input, shape index: {}]   ;;  %s889_s4 = inlined_call_operand.vmem [shape: f32[1,128], index: 4, kind: input, shape index: {}]   ;;  %s890_s5 = inlined_call_operand.vmem [shape: f32[16,128], index: 5, kind: output, shape index: {}]  }
   0x1   :  { %11 = vsyncpa [#allocation5], 0  ;;  %s776_s18 = smov 0  }
   0x2 LB: > { %s782_s19 = sadd.s32 4294967295, %s738_s18   ;;  %p520_p0 = scmp.ge.s32.totalorder %s738_s18, 1  ;;  %s738_s18 = sphi %s776_s18, %s17_s18  }
   0x3   : > { %p158_p1 = scmp.lt.s32.totalorder %s738_s18, 3  ;;  %s740_s20 = smov [#allocation2]  }
   0x4   : > { %s170_s21 = sshll.u32 %s740_s20, 4  ;;  %p652_p3 = scmp.eq.s32.totalorder %s782_s19, 0  ;;  %s171_s21 = int_to_ptr.vmem [resolvable:$true] %s170_s21 }
   0x5   : > { %p786_p2 = pnand %p520_p0, %p158_p1  ;;  %s741_s23 = smov [#allocation4]  }
   0x6   : > { %s186_s24 = sshll.u32 %s741_s23, 4  ;;  %s683_s26 = scalar_lea.vmem %s171_s21, 2048  ;;  %s187_s24 = int_to_ptr.vmem [resolvable:$true] %s186_s24 }
   0x7   : > { %p645_p4 = pneg %p786_p2  ;;  %p684_p7 = scmp.ne.s32.totalorder %s171_s21, %s683_s26 }
   0x8   : > { %p691_p10 = scmp.lt.s32.totalorder %s171_s21, %s171_s21  ;;  %p692_p11 = scmp.lt.s32.totalorder %s683_s26, %s683_s26 }
   0x9   : > { %p795_p5 = pnand %p652_p3, %p645_p4 }
   0xa   : > { %p693_p12 = por %p692_p11, %p691_p10 }
   0xb   : > { %p674_p6 = pneg %p795_p5 }
   0xd   : > { %p686_p8 = pnand %p684_p7, %p674_p6 }
   0xf   : > { %p687_p9 = pneg %p686_p8 }
  0x11   : > { %p694_p13 = pnand %p693_p12, %p687_p9 }
  0x13   : > { %697 = shalt.err (!%p694_p13)
}
  0x14   : > { %s742_s27 = smov 128   ;;  %s743_s28 = smov 8  }
  0x15   : > { %648 = dma.hbm_to_vmem [thread:$0]  (!%p795_p5), %s886_s1, 2048, %s171_s21, [#allocation3], %s742_s27, %s742_s27, %s743_s28  }
  0x16   : > { %s709_s6 = scalar_lea.vmem %s187_s24, 2048  ;;  %p717_p7 = scmp.lt.s32.totalorder %s187_s24, %s187_s24 }
  0x17   : > { %p710_p0 = scmp.ne.s32.totalorder %s187_s24, %s709_s6  ;;  %p718_p8 = scmp.lt.s32.totalorder %s709_s6, %s709_s6 }
  0x19   : > { %p712_p1 = pnand %p710_p0, %p674_p6  ;;  %p719_p10 = por %p718_p8, %p717_p7 }
  0x1b   : > { %p713_p4 = pneg %p712_p1 }
  0x1d   : > { %p720_p9 = pnand %p719_p10, %p713_p4 }
  0x1f   : > { %723 = shalt.err (!%p720_p9)
}
  0x20   : > { %651 = dma.hbm_to_vmem [thread:$0]  (!%p795_p5), %s888_s3, 2048, %s187_s24, [#allocation5], %s742_s27, %s742_s27, %s743_s28  }
  0x21   : > { %212 = sbr.rel (%p786_p2) target bundleno = 486 (0x1e6), region = 40 }
  0x26   : > { %729 = dma.done.wait (%p652_p3), [#allocation3], 2048  }
  0x27   : > { %731 = vsyncadd (%p652_p3), [#allocation3], 4294965248 }
  0x28   : > { %733 = dma.done.wait (%p652_p3), [#allocation5], 2048  }
  0x29   : > { %735 = vsyncadd (%p652_p3), [#allocation5], 4294965248  ;;  %v744_v0 = vmov 0.0   ;;  %vm745_vm0 = vmmov 0   ;;  %v266_v1 = vld [vmem:[#allocation2 + $0x78] sm:$0xff]  ;;  %v265_v2 = vld [vmem:[#allocation2 + $0x70] sm:$0xff] }
  0x2a   : > { %567 = vmatprep.subr.mxu0 %v744_v0  ;;  %599 = vmatprep.mubr.msk.f32.mxu0 %vm745_vm0, %v744_v0  ;;  %v264_v3 = vld [vmem:[#allocation2 + $0x68] sm:$0xff]  ;;  %v263_v4 = vld [vmem:[#allocation2 + $0x60] sm:$0xff]  ;;  %v364_v5 = vld [vmem:[#allocation4 + $0x78] sm:$0xff]  ;;  %p242_p2 = scmp.lt.s32.totalorder %s782_s19, 1 }
  0x2b   : > { %602 = vmatprep.subr.mxu1 %v744_v0  ;;  %634 = vmatprep.mubr.msk.f32.mxu1 %vm745_vm0, %v744_v0  ;;  %v262_v6 = vld [vmem:[#allocation2 + $0x58] sm:$0xff]  ;;  %v363_v7 = vld [vmem:[#allocation4 + $0x70] sm:$0xff]  ;;  %v362_v8 = vld [vmem:[#allocation4 + $0x68] sm:$0xff] }
  0x2c   : > { %568 = vmatpush3.msra.mxu0 %v266_v1  ;;  %603 = vmatpush3.msra.mxu1 %v364_v5  ;;  %v261_v9 = vld [vmem:[#allocation2 + $0x50] sm:$0xff]  ;;  %v361_v10 = vld [vmem:[#allocation4 + $0x60] sm:$0xff]  ;;  %v260_v11 = vld [vmem:[#allocation2 + $0x48] sm:$0xff]  ;;  %s894_s19 = smov (!%p242_p2, %s782_s19), 1 }
  0x2d   : > { %569 = vmatprep.subr.mxu0 %v744_v0  ;;  %604 = vmatprep.subr.mxu1 %v744_v0  ;;  %v259_v12 = vld [vmem:[#allocation2 + $0x40] sm:$0xff]  ;;  %v258_v13 = vld [vmem:[#allocation2 + $0x38] sm:$0xff]  ;;  %v257_v14 = vld [vmem:[#allocation2 + $0x30] sm:$0xff]  ;;  %s527_s9 = sshll.u32 %s894_s19, 3 }
  0x2e   : > { %570 = vmatpush3.msra.mxu0 %v265_v2  ;;  %605 = vmatpush3.msra.mxu1 %v363_v7  ;;  %v256_v15 = vld [vmem:[#allocation2 + $0x28] sm:$0xff]  ;;  %v255_v16 = vld [vmem:[#allocation2 + $0x20] sm:$0xff]  ;;  %v254_v17 = vld [vmem:[#allocation2 + $0x18] sm:$0xff]  ;;  %s245_s12 = scalar_lea.vmem %s885_s0, %s527_s9  ;;  %s249_s21 = scalar_lea.vmem %s890_s5, %s527_s9 }
  0x2f   : > { %571 = vmatprep.subr.mxu0 %v744_v0  ;;  %606 = vmatprep.subr.mxu1 %v744_v0  ;;  %v253_v18 = vld [vmem:[#allocation2 + $0x10] sm:$0xff]  ;;  %v252_v19 = vld [vmem:[#allocation2 + $0x8] sm:$0xff]  ;;  %v251_v20 = vld [vmem:[#allocation2] sm:$0xff] }
  0x30   : > { %572 = vmatpush3.msra.mxu0 %v264_v3  ;;  %607 = vmatpush3.msra.mxu1 %v362_v8  ;;  %v250_v21 = vld [vmem:[%s245_s12] sm:$0xff]  ;;  %v360_v22 = vld [vmem:[#allocation4 + $0x58] sm:$0xff]  ;;  %v359_v23 = vld [vmem:[#allocation4 + $0x50] sm:$0xff] }
  0x31   : > { %573 = vmatprep.subr.mxu0 %v744_v0  ;;  %608 = vmatprep.subr.mxu1 %v744_v0  ;;  %v358_v24 = vld [vmem:[#allocation4 + $0x48] sm:$0xff]  ;;  %v357_v25 = vld [vmem:[#allocation4 + $0x40] sm:$0xff]  ;;  %v356_v26 = vld [vmem:[#allocation4 + $0x38] sm:$0xff] }
  0x32   : > { %574 = vmatpush3.msra.mxu0 %v263_v4  ;;  %609 = vmatpush3.msra.mxu1 %v361_v10  ;;  %v355_v27 = vld [vmem:[#allocation4 + $0x30] sm:$0xff]  ;;  %v354_v28 = vld [vmem:[#allocation4 + $0x28] sm:$0xff]  ;;  %v353_v29 = vld [vmem:[#allocation4 + $0x20] sm:$0xff] }
  0x33   : > { %575 = vmatprep.subr.mxu0 %v744_v0  ;;  %610 = vmatprep.subr.mxu1 %v744_v0  ;;  %v352_v30 = vld [vmem:[#allocation4 + $0x18] sm:$0xff]  ;;  %v351_v31 = vld [vmem:[#allocation4 + $0x10] sm:$0xff]  ;;  %v350_v32 = vld [vmem:[#allocation4 + $0x8] sm:$0xff] }
  0x34   : > { %576 = vmatpush3.msra.mxu0 %v262_v6  ;;  %611 = vmatpush3.msra.mxu1 %v360_v22  ;;  %v349_v33 = vld [vmem:[#allocation4] sm:$0xff] }
  0x35   : > { %577 = vmatprep.subr.mxu0 %v744_v0  ;;  %612 = vmatprep.subr.mxu1 %v744_v0  ;;  %v529_v34 = vld [vmem:[%s887_s2] ss:$0 sm:$0xff] }
  0x36   : > { %578 = vmatpush3.msra.mxu0 %v261_v9  ;;  %613 = vmatpush3.msra.mxu1 %v359_v23  ;;  %v530_v43 = vld [vmem:[%s889_s4] ss:$0 sm:$0xff] }
  0x37   : > { %579 = vmatprep.subr.mxu0 %v744_v0  ;;  %614 = vmatprep.subr.mxu1 %v744_v0 }
  0x38   : > { %580 = vmatpush3.msra.mxu0 %v260_v11  ;;  %615 = vmatpush3.msra.mxu1 %v358_v24 }
  0x39   : > { %581 = vmatprep.subr.mxu0 %v744_v0  ;;  %616 = vmatprep.subr.mxu1 %v744_v0 }
  0x3a   : > { %582 = vmatpush3.msra.mxu0 %v259_v12  ;;  %617 = vmatpush3.msra.mxu1 %v357_v25 }
  0x3b   : > { %583 = vmatprep.subr.mxu0 %v744_v0  ;;  %618 = vmatprep.subr.mxu1 %v744_v0 }
  0x3c   : > { %584 = vmatpush3.msra.mxu0 %v258_v13  ;;  %619 = vmatpush3.msra.mxu1 %v356_v26 }
  0x3d   : > { %585 = vmatprep.subr.mxu0 %v744_v0  ;;  %620 = vmatprep.subr.mxu1 %v744_v0 }
  0x3e   : > { %586 = vmatpush3.msra.mxu0 %v257_v14  ;;  %621 = vmatpush3.msra.mxu1 %v355_v27 }
  0x3f   : > { %587 = vmatprep.subr.mxu0 %v744_v0  ;;  %622 = vmatprep.subr.mxu1 %v744_v0 }
  0x40   : > { %588 = vmatpush3.msra.mxu0 %v256_v15  ;;  %623 = vmatpush3.msra.mxu1 %v354_v28 }
  0x41   : > { %589 = vmatprep.subr.mxu0 %v744_v0  ;;  %624 = vmatprep.subr.mxu1 %v744_v0 }
  0x42   : > { %590 = vmatpush3.msra.mxu0 %v255_v16  ;;  %625 = vmatpush3.msra.mxu1 %v353_v29 }
  0x43   : > { %591 = vmatprep.subr.mxu0 %v744_v0  ;;  %626 = vmatprep.subr.mxu1 %v744_v0 }
  0x44   : > { %592 = vmatpush3.msra.mxu0 %v254_v17  ;;  %627 = vmatpush3.msra.mxu1 %v352_v30 }
  0x45   : > { %593 = vmatprep.subr.mxu0 %v744_v0  ;;  %628 = vmatprep.subr.mxu1 %v744_v0 }
  0x46   : > { %594 = vmatpush3.msra.mxu0 %v253_v18  ;;  %629 = vmatpush3.msra.mxu1 %v351_v31 }
  0x47   : > { %595 = vmatprep.subr.mxu0 %v744_v0  ;;  %630 = vmatprep.subr.mxu1 %v744_v0 }
  0x48   : > { %596 = vmatpush3.msra.mxu0 %v252_v19  ;;  %631 = vmatpush3.msra.mxu1 %v350_v32 }
  0x49   : > { %597 = vmatprep.subr.mxu0 %v744_v0  ;;  %632 = vmatprep.subr.mxu1 %v744_v0 }
  0x4a   : > { %598 = vmatpush3.msra.mxu0 %v251_v20  ;;  %633 = vmatpush3.msra.mxu1 %v349_v33 }
  0x4b   : > { %600 = vmatmul.mubr.f32.vlgmr.msra.gmra.mxu0 %v250_v21 }
 0x10b   : > { %v340_v35 = vpop.f32.mrf.mxu0 }
 0x10c   : > { %v341_v36 = vadd.f32 %v529_v34, %v340_v35 }
 0x10d   : > { %v601_v37 = vpop.f32.mrf.mxu0 }
 0x10e   : > { %v345_v38 = vmul.f32 0.70710677, %v341_v36  ;;  %v344_v40 = vmul.f32 0.5, %v341_v36 }
 0x110   : > { %670 = verf.f32 %v345_v38 }
 0x11d   : > { %v671_v39 = vpop.eup %670 }
 0x11e   : > { %v347_v41 = vadd.f32 1.0, %v671_v39 }
 0x120   : > { %v348_v42 = vmul.f32 %v347_v41, %v344_v40 }
 0x122   : > { %635 = vmatmul.mubr.f32.vlgmr.msra.gmra.mxu1 %v348_v42 }
 0x1e2   : > { %v438_v44 = vpop.f32.mrf.mxu1 }
 0x1e3   : > { %v439_v45 = vadd.f32 %v530_v43, %v438_v44 }
 0x1e4   : > { %v636_v46 = vpop.f32.mrf.mxu1 }
 0x1e5   : > { %442 = vst [vmem:[%s249_s21] sm:$0xff] %v439_v45 }
 0x1e6 PF: > { %s17_s18 = sadd.s32 1, %s738_s18  }
 0x1e7   : > { %p14_p3 = scmp.ge.s32.totalorder %s17_s18, 4  }
 0x1e9   :  { %16 = sbr.rel (!%p14_p3) target bundleno = 2 (0x2), region = 79 }
 0x1ee   :  { %462 = vsyncpa [#allocation3], 1 }
 0x1ef   :  { %464 = vsyncpa [#allocation3 + $0x1], 1 }
 0x1f0   :  { %465 = vsyncpa [#allocation5], 1 }

</bundles_post_ra>
